<compile_context>
chip_gen: v7x
topology: tpu7x:2x2x1
jax: 0.10.0
libtpu: 0.0.40
codegen_flags: <defaults>
</compile_context>

<pallas_src>
import functools
import math

import jax
import jax.numpy as jnp
from jax import lax
from jax.experimental import pallas as pl
from jax.experimental.pallas import tpu as pltpu

_LANE = 128
# Budget for the double-buffered streamed embedding blocks.  Sized so the
# pipelined working set stays well under every generation's scoped-VMEM
# defaults (16 MiB v5e / 32 MiB v6e,v7x) and v7x's 64 MiB physical VMEM.
_DEFAULT_EMB_VMEM_BUDGET = 20 << 20
_VMEM_LIMIT_CAP = 56 << 20   # keep below v7x's 64 MiB physical VMEM


def _round_up(x, m):
    return ((x + m - 1) // m) * m


# ---------------------------------------------------------------------------
# Fused kernel: streamed reconstruction reduction + once-only CE / Frobenius.
# ---------------------------------------------------------------------------
def _toad_fused_kernel(*refs, B, rec_weight, trans_param, with_adv, use_adv,
                       rho_adv):
    if with_adv:
        (text_ref, text_rec_ref, topic_ref, topic_rec_ref,
         text_len_ref, topic_len_ref, labels_ref, topic_i_ref,
         w_ref, stance_ref, adv_ref, adv2_ref, adv_param_ref,
         out_ref, text_acc, topic_acc) = refs
    else:
        (text_ref, text_rec_ref, topic_ref, topic_rec_ref,
         text_len_ref, topic_len_ref, labels_ref,
         w_ref, stance_ref,
         out_ref, text_acc, topic_acc) = refs

    step = pl.program_id(0)
    last = pl.num_programs(0) - 1

    # ---- init per-batch accumulators on the first reduction step ----------
    @pl.when(step == 0)
    def _init():
        text_acc[...] = jnp.zeros_like(text_acc)
        topic_acc[...] = jnp.zeros_like(topic_acc)

    # ---- streamed squared-error accumulation (runs every grid step) -------
    # Inputs arrive in their native HBM dtype; cast + math in f32 (free under
    # the block DMA; v5e VPU has no bf16 anyway).
    def _accumulate(ori_ref, rec_ref, acc_ref):
        ori = ori_ref[...].astype(jnp.float32)            # (B, chunk) lane-dense
        rec = rec_ref[...].astype(jnp.float32)
        d = rec - jnp.tanh(ori)
        acc_ref[...] += jnp.sum(d * d, axis=1, keepdims=True)

    _accumulate(text_ref, text_rec_ref, text_acc)
    _accumulate(topic_ref, topic_rec_ref, topic_acc)

    # ---- once-only terms + finalize, gated on the last step ---------------
    @pl.when(step == last)
    def _finalize():
        def rec_term(acc_ref, len_ref):
            # Finalize runs once on B elements; exact divide (the EUP approx
            # reciprocal micro-opt is deliberately skipped here).
            per_b = acc_ref[...] / len_ref[...]
            return (rec_weight / B) * jnp.sum(per_b)

        def ce_term(logits_ref, lab_col_ref):
            lg = logits_ref[...].astype(jnp.float32)       # (B, C)
            m = jnp.max(lg, axis=1, keepdims=True)
            lse = m + jnp.log(jnp.sum(jnp.exp(lg - m), axis=1, keepdims=True))
            cols = lax.broadcasted_iota(jnp.int32, lg.shape, 1)
            onehot = (cols == lab_col_ref[...]).astype(jnp.float32)
            picked = jnp.sum(lg * onehot, axis=1, keepdims=True)
            return jnp.sum(lse - picked) / B

        lrec = rec_term(text_acc, text_len_ref)
        lrec_topic = rec_term(topic_acc, topic_len_ref)

        # Transformation loss: trans_param * ||W - I||_F^2 (executes once).
        wf = w_ref[...].astype(jnp.float32)
        d_w = wf.shape[0]
        r = lax.broadcasted_iota(jnp.int32, (d_w, d_w), 0)
        c = lax.broadcasted_iota(jnp.int32, (d_w, d_w), 1)
        dw = wf - (r == c).astype(jnp.float32)
        ltrans = trans_param * jnp.sum(dw * dw)

        llabel = ce_term(stance_ref, labels_ref)

        total = lrec + lrec_topic + ltrans + llabel
        adversarial = jnp.float32(0.0)
        if with_adv:
            ladv = ce_term(adv_ref, topic_i_ref)
            adv_ce = ce_term(adv2_ref, topic_i_ref)
            if rho_adv:
                adversarial = adv_param_ref[0] * adv_ce
            else:
                adversarial = adv_ce
            if use_adv:
                total = total - adv_param_ref[0] * ladv

        out_ref[0] = total
        out_ref[1] = adversarial


# ---------------------------------------------------------------------------
# Jitted wrapper: chunk planning + one pallas_call.
# ---------------------------------------------------------------------------
@functools.partial(
    jax.jit,
    static_argnames=("rec_weight", "trans_param", "with_adv", "use_adv",
                     "rho_adv", "emb_budget_bytes"))
def _toad_loss_jit(text, text_rec, text_l, topic, topic_rec, topic_l, W,
                   stance, labels, adv, adv2, topic_i, adv_param, *,
                   rec_weight, trans_param, with_adv, use_adv, rho_adv,
                   emb_budget_bytes):
    B, S_t, D_t = text.shape
    _, S_p, D_p = topic.shape
    L_t = S_t * D_t
    L_p = S_p * D_p

    # ---- plan the streamed reduction --------------------------------------
    # Double-buffered working set per step ≈ 2 bufs x B x (ct+cp) x 2 operands.
    itemsize = max(text.dtype.itemsize, text_rec.dtype.itemsize,
                   topic.dtype.itemsize, topic_rec.dtype.itemsize)
    cols_budget = max(_LANE, emb_budget_bytes // (4 * B * itemsize))
    n_steps = max(1, pl.cdiv(L_t + L_p, cols_budget))
    ct = _round_up(pl.cdiv(L_t, n_steps), _LANE)
    cp = _round_up(pl.cdiv(L_p, n_steps), _LANE)
    lt_pad, lp_pad = ct * n_steps, cp * n_steps

    def flat_pad(x, total_cols, length):
        x2d = x.reshape(B, length)                 # lane-dense (B, S*D)
        if total_cols == length:
            return x2d
        # Zero padding is loss-neutral: recon(0) - tanh(0) = 0.
        return jnp.pad(x2d, ((0, 0), (0, total_cols - length)))

    text2d = flat_pad(text, lt_pad, L_t)
    text_rec2d = flat_pad(text_rec, lt_pad, L_t)
    topic2d = flat_pad(topic, lp_pad, L_p)
    topic_rec2d = flat_pad(topic_rec, lp_pad, L_p)

    # Small per-batch quantities as (B,1) VMEM columns (one tiny tile each),
    # replacing the old per-scalar SMEM reads + unrolled selects.
    text_len = text_l.astype(jnp.float32).reshape(B, 1)
    topic_len = topic_l.astype(jnp.float32).reshape(B, 1)
    labels_col = labels.astype(jnp.int32).reshape(B, 1)

    def stream_spec(cols):
        return pl.BlockSpec((B, cols), lambda s: (0, s))

    def resident_spec(arr):                        # DMA'd once (constant index)
        zeros = (0,) * arr.ndim
        return pl.BlockSpec(arr.shape, lambda s, _z=zeros: _z)

    smem_spec = pl.BlockSpec(memory_space=pltpu.MemorySpace.SMEM)

    args = [text2d, text_rec2d, topic2d, topic_rec2d,
            text_len, topic_len, labels_col]
    in_specs = [stream_spec(ct), stream_spec(ct),
                stream_spec(cp), stream_spec(cp),
                resident_spec(text_len), resident_spec(topic_len),
                resident_spec(labels_col)]
    if with_adv:
        topic_i_col = topic_i.astype(jnp.int32).reshape(B, 1)
        adv_param_arr = adv_param.astype(jnp.float32).reshape(1)
        args += [topic_i_col, W, stance, adv, adv2, adv_param_arr]
        in_specs += [resident_spec(topic_i_col), resident_spec(W),
                     resident_spec(stance), resident_spec(adv),
                     resident_spec(adv2), smem_spec]
    else:
        args += [W, stance]
        in_specs += [resident_spec(W), resident_spec(stance)]

    kern = functools.partial(
        _toad_fused_kernel, B=B, rec_weight=float(rec_weight),
        trans_param=float(trans_param), with_adv=with_adv, use_adv=use_adv,
        rho_adv=rho_adv)

    emb_step_bytes = 2 * B * (
        ct * (text.dtype.itemsize + text_rec.dtype.itemsize)
        + cp * (topic.dtype.itemsize + topic_rec.dtype.itemsize))
    vmem_limit = int(min(_VMEM_LIMIT_CAP,
                         max(24 << 20, emb_step_bytes + (8 << 20))))

    terms = pl.pallas_call(
        kern,
        out_shape=jax.ShapeDtypeStruct((2,), jnp.float32),
        grid_spec=pltpu.PrefetchScalarGridSpec(
            num_scalar_prefetch=0,
            grid=(n_steps,),
            in_specs=in_specs,
            out_specs=smem_spec,
            scratch_shapes=[pltpu.VMEM((B, 1), jnp.float32),
                            pltpu.VMEM((B, 1), jnp.float32)],
        ),
        compiler_params=pltpu.CompilerParams(
            dimension_semantics=("arbitrary",),
            vmem_limit_bytes=vmem_limit,
        ),
    )(*args)

    return terms[0], terms[1]


# ---------------------------------------------------------------------------
# TOADLoss wrapper (Python-side state outside jit, math inside one pallas_call)
# ---------------------------------------------------------------------------
class TOADLoss:
    def __init__(self, trans_dim, trans_param, num_no_adv=None, tot_epochs=20,
                 rho_adv=False, gamma=10, rec_weight=1, semi_sup=False,
                 n_outputs=3, emb_vmem_budget_bytes=_DEFAULT_EMB_VMEM_BUDGET):
        self.trans_dim = trans_dim
        self.trans_param = trans_param
        self.adv_param = 0.0
        self.semi_sup = semi_sup
        self.n_outputs = n_outputs
        # TODO(synk): semi_sup ignore_index branch of CrossEntropyLoss not
        # implemented (default semi_sup=False matches the standard CE path).
        self.use_adv = num_no_adv == 0
        self.num_no_adv = num_no_adv
        self.tot_epochs = tot_epochs
        self.rec_weight = rec_weight
        self.i = 0
        self.rho_adv = rho_adv
        self.gamma = gamma
        self.emb_vmem_budget_bytes = int(emb_vmem_budget_bytes)

    def update_param_using_p(self, epoch):
        if epoch >= self.num_no_adv:
            self.use_adv = True
            tot = self.tot_epochs - self.num_no_adv
            p = (epoch - self.num_no_adv) / tot
            self.adv_param = 2 / (1 + math.exp(-self.gamma * p)) - 1
        else:
            self.use_adv = False

    def __call__(self, pred_info, labels, compute_adv_loss=True):
        self.i += 1
        if compute_adv_loss:
            adv = pred_info['adv_pred']
            adv2 = pred_info['adv_pred_']
            topic_i = pred_info['topic_i']
            adv_param = jnp.asarray(self.adv_param, dtype=jnp.float32)
        else:
            # No placeholder transfers: unused operands are simply not passed.
            adv = adv2 = topic_i = adv_param = None

        return _toad_loss_jit(
            pred_info['text'], pred_info['text_recon_embeds'], pred_info['text_l'],
            pred_info['topic'], pred_info['topic_recon_embeds'], pred_info['topic_l'],
            pred_info['W'], pred_info['stance_pred'], labels,
            adv, adv2, topic_i, adv_param,
            rec_weight=float(self.rec_weight),
            trans_param=float(self.trans_param),
            with_adv=bool(compute_adv_loss),
            use_adv=bool(self.use_adv),
            rho_adv=bool(self.rho_adv),
            emb_budget_bytes=self.emb_vmem_budget_bytes)


# ---------------------------------------------------------------------------
# Pure-JAX reference (for sanity checking the fused kernel)
# ---------------------------------------------------------------------------
def _ref_rec(ori, model, lens):
    sq = jnp.sum((model - jnp.tanh(ori)) ** 2, axis=2)
    return jnp.mean(jnp.sum(sq, axis=1) / lens.astype(jnp.float32))


def _ref_ce(logits, labels):
    logz = jax.nn.log_softmax(logits.astype(jnp.float32), axis=-1)
    return -jnp.mean(jnp.take_along_axis(logz, labels[:, None], axis=1)[:, 0])


if __name__ == "__main__":
    key = jax.random.PRNGKey(0)
    ks = jax.random.split(key, 12)

    B, S_text, S_topic, D = 4, 8, 4, 32
    trans_dim = 32
    n_outputs, n_topics = 3, 5
    trans_param = 0.1

    pred_info = {
        'text': jax.random.normal(ks[0], (B, S_text, D), jnp.float32),
        'text_recon_embeds': jax.random.normal(ks[1], (B, S_text, D), jnp.float32),
        'text_l': jax.random.randint(ks[2], (B,), 1, S_text + 1),
        'topic': jax.random.normal(ks[3], (B, S_topic, D), jnp.float32),
        'topic_recon_embeds': jax.random.normal(ks[4], (B, S_topic, D), jnp.float32),
        'topic_l': jax.random.randint(ks[5], (B,), 1, S_topic + 1),
        'W': jnp.eye(trans_dim, dtype=jnp.float32)
             + 0.05 * jax.random.normal(ks[6], (trans_dim, trans_dim), jnp.float32),
        'stance_pred': jax.random.normal(ks[7], (B, n_outputs), jnp.float32),
        'adv_pred': jax.random.normal(ks[8], (B, n_topics), jnp.float32),
        'adv_pred_': jax.random.normal(ks[9], (B, n_topics), jnp.float32),
        'topic_i': jax.random.randint(ks[10], (B,), 0, n_topics),
    }
    labels = jax.random.randint(ks[11], (B,), 0, n_outputs)

    ref_total = (_ref_rec(pred_info['text'], pred_info['text_recon_embeds'],
                          pred_info['text_l'])
                 + _ref_rec(pred_info['topic'], pred_info['topic_recon_embeds'],
                            pred_info['topic_l'])
                 + trans_param * jnp.sum((pred_info['W'] - jnp.eye(trans_dim)) ** 2)
                 + _ref_ce(pred_info['stance_pred'], labels))
    ref_adv = _ref_ce(pred_info['adv_pred_'], pred_info['topic_i'])

    # 1) Default VMEM budget: whole reduction fits in one grid step.
    loss_fn = TOADLoss(trans_dim=trans_dim, trans_param=trans_param)
    total, adv = loss_fn(pred_info, labels, compute_adv_loss=True)
    total, adv = jax.block_until_ready((total, adv))
    assert jnp.allclose(total, ref_total, rtol=1e-5, atol=1e-5), (total, ref_total)
    assert jnp.allclose(adv, ref_adv, rtol=1e-5, atol=1e-5), (adv, ref_adv)

    # 2) Tiny budget forces a multi-step streamed reduction (exercises the
    #    gridded accumulate, pl.when init/finalize and zero-padding paths).
    loss_small = TOADLoss(trans_dim=trans_dim, trans_param=trans_param,
                          emb_vmem_budget_bytes=2048)
    total_s, adv_s = loss_small(pred_info, labels, compute_adv_loss=True)
    total_s, adv_s = jax.block_until_ready((total_s, adv_s))
    assert jnp.allclose(total_s, ref_total, rtol=1e-5, atol=1e-5), (total_s, ref_total)
    assert jnp.allclose(adv_s, ref_adv, rtol=1e-5, atol=1e-5), (adv_s, ref_adv)

    # 3) compute_adv_loss=False path (no adversarial operands transferred).
    total_na, adv_na = loss_fn(pred_info, labels, compute_adv_loss=False)
    total_na, adv_na = jax.block_until_ready((total_na, adv_na))
    assert jnp.allclose(total_na, ref_total, rtol=1e-5, atol=1e-5), (total_na, ref_total)
    assert jnp.allclose(adv_na, 0.0), adv_na

    print("KERNEL_OK")
</pallas_src>

<mosaic_0001>
module attributes {stable_mosaic.version = 11 : i64} {
  func.func @_toad_fused_kernel(%arg0: i32, %arg1: memref<4x256xf32, #tpu.memory_space<vmem>>, %arg2: memref<4x256xf32, #tpu.memory_space<vmem>>, %arg3: memref<4x128xf32, #tpu.memory_space<vmem>>, %arg4: memref<4x128xf32, #tpu.memory_space<vmem>>, %arg5: memref<4x1xf32, #tpu.memory_space<vmem>>, %arg6: memref<4x1xf32, #tpu.memory_space<vmem>>, %arg7: memref<4x1xi32, #tpu.memory_space<vmem>>, %arg8: memref<4x1xi32, #tpu.memory_space<vmem>>, %arg9: memref<32x32xf32, #tpu.memory_space<vmem>>, %arg10: memref<4x3xf32, #tpu.memory_space<vmem>>, %arg11: memref<4x5xf32, #tpu.memory_space<vmem>>, %arg12: memref<4x5xf32, #tpu.memory_space<vmem>>, %arg13: memref<1xf32, #tpu.memory_space<smem>>, %arg14: memref<2xf32, #tpu.memory_space<smem>>, %arg15: memref<4x1xf32, #tpu.memory_space<vmem>>, %arg16: memref<4x1xf32, #tpu.memory_space<vmem>>) attributes {dimension_semantics = [#tpu.dimension_semantics<arbitrary>], iteration_bounds = array<i64: 1>, scalar_prefetch = 0 : i64, scratch_operands = 2 : i64, tpu.core_type = #tpu.core_type<tc>, window_params = [{transform_indices = @transform_0, window_bounds = array<i64: 4, 256>}, {transform_indices = @transform_1, window_bounds = array<i64: 4, 256>}, {transform_indices = @transform_2, window_bounds = array<i64: 4, 128>}, {transform_indices = @transform_3, window_bounds = array<i64: 4, 128>}, {pipeline_mode = #tpu.pipeline_mode<synchronous>, transform_indices = @transform_4, window_bounds = array<i64: 4, 1>}, {pipeline_mode = #tpu.pipeline_mode<synchronous>, transform_indices = @transform_5, window_bounds = array<i64: 4, 1>}, {pipeline_mode = #tpu.pipeline_mode<synchronous>, transform_indices = @transform_6, window_bounds = array<i64: 4, 1>}, {pipeline_mode = #tpu.pipeline_mode<synchronous>, transform_indices = @transform_7, window_bounds = array<i64: 4, 1>}, {pipeline_mode = #tpu.pipeline_mode<synchronous>, transform_indices = @transform_8, window_bounds = array<i64: 32, 32>}, {pipeline_mode = #tpu.pipeline_mode<synchronous>, transform_indices = @transform_9, window_bounds = array<i64: 4, 3>}, {pipeline_mode = #tpu.pipeline_mode<synchronous>, transform_indices = @transform_10, window_bounds = array<i64: 4, 5>}, {pipeline_mode = #tpu.pipeline_mode<synchronous>, transform_indices = @transform_11, window_bounds = array<i64: 4, 5>}, {transform_indices = @transform_12, window_bounds = array<i64: 1>}, {transform_indices = @transform_13, window_bounds = array<i64: 2>}]} {
    %c0_i32 = arith.constant 0 : i32
    %0 = arith.cmpi eq, %arg0, %c0_i32 : i32
    %1 = arith.extui %0 : i1 to i32
    %c0_i32_0 = arith.constant 0 : i32
    %2 = arith.cmpi ne, %1, %c0_i32_0 : i32
    scf.if %2 {
      %cst_19 = arith.constant 0.000000e+00 : f32
      %26 = vector.broadcast %cst_19 : f32 to vector<4x1xf32>
      %c0_20 = arith.constant 0 : index
      %c0_21 = arith.constant 0 : index
      %27 = vector.load %arg15[%c0_20, %c0_21] : memref<4x1xf32, #tpu.memory_space<vmem>>, vector<4x1xf32>
      tpu.vector_store %arg15[%c0_20, %c0_21], %26 {strides = array<i32>} : memref<4x1xf32, #tpu.memory_space<vmem>>, vector<4x1xf32>,
      %cst_22 = arith.constant 0.000000e+00 : f32
      %28 = vector.broadcast %cst_22 : f32 to vector<4x1xf32>
      %c0_23 = arith.constant 0 : index
      %c0_24 = arith.constant 0 : index
      %29 = vector.load %arg16[%c0_23, %c0_24] : memref<4x1xf32, #tpu.memory_space<vmem>>, vector<4x1xf32>
      tpu.vector_store %arg16[%c0_23, %c0_24], %28 {strides = array<i32>} : memref<4x1xf32, #tpu.memory_space<vmem>>, vector<4x1xf32>,
    } else {
    }
    %c0 = arith.constant 0 : index
    %c0_1 = arith.constant 0 : index
    %3 = vector.load %arg1[%c0, %c0_1] : memref<4x256xf32, #tpu.memory_space<vmem>>, vector<4x256xf32>
    %c0_2 = arith.constant 0 : index
    %c0_3 = arith.constant 0 : index
    %4 = vector.load %arg2[%c0_2, %c0_3] : memref<4x256xf32, #tpu.memory_space<vmem>>, vector<4x256xf32>
    %5 = math.tanh %3 : vector<4x256xf32>
    %6 = arith.subf %4, %5 : vector<4x256xf32>
    %c0_4 = arith.constant 0 : index
    %c0_5 = arith.constant 0 : index
    %7 = vector.load %arg15[%c0_4, %c0_5] : memref<4x1xf32, #tpu.memory_space<vmem>>, vector<4x1xf32>
    %8 = arith.mulf %6, %6 : vector<4x256xf32>
    %cst = arith.constant dense<0.000000e+00> : vector<4xf32>
    %9 = vector.multi_reduction <add>, %8, %cst [1] : vector<4x256xf32> to vector<4xf32>
    %10 = vector.shape_cast %9 : vector<4xf32> to vector<4x1xf32>
    %11 = arith.addf %7, %10 : vector<4x1xf32>
    %c0_6 = arith.constant 0 : index
    %c0_7 = arith.constant 0 : index
    %12 = vector.load %arg15[%c0_6, %c0_7] : memref<4x1xf32, #tpu.memory_space<vmem>>, vector<4x1xf32>
    tpu.vector_store %arg15[%c0_6, %c0_7], %11 {strides = array<i32>} : memref<4x1xf32, #tpu.memory_space<vmem>>, vector<4x1xf32>,
    %c0_8 = arith.constant 0 : index
    %c0_9 = arith.constant 0 : index
    %13 = vector.load %arg3[%c0_8, %c0_9] : memref<4x128xf32, #tpu.memory_space<vmem>>, vector<4x128xf32>
    %c0_10 = arith.constant 0 : index
    %c0_11 = arith.constant 0 : index
    %14 = vector.load %arg4[%c0_10, %c0_11] : memref<4x128xf32, #tpu.memory_space<vmem>>, vector<4x128xf32>
    %15 = math.tanh %13 : vector<4x128xf32>
    %16 = arith.subf %14, %15 : vector<4x128xf32>
    %c0_12 = arith.constant 0 : index
    %c0_13 = arith.constant 0 : index
    %17 = vector.load %arg16[%c0_12, %c0_13] : memref<4x1xf32, #tpu.memory_space<vmem>>, vector<4x1xf32>
    %18 = arith.mulf %16, %16 : vector<4x128xf32>
    %cst_14 = arith.constant dense<0.000000e+00> : vector<4xf32>
    %19 = vector.multi_reduction <add>, %18, %cst_14 [1] : vector<4x128xf32> to vector<4xf32>
    %20 = vector.shape_cast %19 : vector<4xf32> to vector<4x1xf32>
    %21 = arith.addf %17, %20 : vector<4x1xf32>
    %c0_15 = arith.constant 0 : index
    %c0_16 = arith.constant 0 : index
    %22 = vector.load %arg16[%c0_15, %c0_16] : memref<4x1xf32, #tpu.memory_space<vmem>>, vector<4x1xf32>
    tpu.vector_store %arg16[%c0_15, %c0_16], %21 {strides = array<i32>} : memref<4x1xf32, #tpu.memory_space<vmem>>, vector<4x1xf32>,
    %c0_i32_17 = arith.constant 0 : i32
    %23 = arith.cmpi eq, %arg0, %c0_i32_17 : i32
    %24 = arith.extui %23 : i1 to i32
    %c0_i32_18 = arith.constant 0 : i32
    %25 = arith.cmpi ne, %24, %c0_i32_18 : i32
    scf.if %25 {
      %c0_19 = arith.constant 0 : index
      %c0_20 = arith.constant 0 : index
      %26 = vector.load %arg15[%c0_19, %c0_20] : memref<4x1xf32, #tpu.memory_space<vmem>>, vector<4x1xf32>
      %c0_21 = arith.constant 0 : index
      %c0_22 = arith.constant 0 : index
      %27 = vector.load %arg5[%c0_21, %c0_22] : memref<4x1xf32, #tpu.memory_space<vmem>>, vector<4x1xf32>
      %28 = arith.divf %26, %27 : vector<4x1xf32>
      %29 = vector.shape_cast %28 : vector<4x1xf32> to vector<1x4x1xf32>
      %cst_23 = arith.constant dense<0.000000e+00> : vector<1xf32>
      %30 = vector.multi_reduction <add>, %29, %cst_23 [1, 2] : vector<1x4x1xf32> to vector<1xf32>
      %31 = vector.shape_cast %30 : vector<1xf32> to vector<1x1x1xf32>
      %32 = vector.extract %31[0, 0, 0] : f32 from vector<1x1x1xf32>
      %cst_24 = arith.constant 2.500000e-01 : f32
      %33 = arith.mulf %cst_24, %32 : f32
      %c0_25 = arith.constant 0 : index
      %c0_26 = arith.constant 0 : index
      %34 = vector.load %arg16[%c0_25, %c0_26] : memref<4x1xf32, #tpu.memory_space<vmem>>, vector<4x1xf32>
      %c0_27 = arith.constant 0 : index
      %c0_28 = arith.constant 0 : index
      %35 = vector.load %arg6[%c0_27, %c0_28] : memref<4x1xf32, #tpu.memory_space<vmem>>, vector<4x1xf32>
      %36 = arith.divf %34, %35 : vector<4x1xf32>
      %37 = vector.shape_cast %36 : vector<4x1xf32> to vector<1x4x1xf32>
      %cst_29 = arith.constant dense<0.000000e+00> : vector<1xf32>
      %38 = vector.multi_reduction <add>, %37, %cst_29 [1, 2] : vector<1x4x1xf32> to vector<1xf32>
      %39 = vector.shape_cast %38 : vector<1xf32> to vector<1x1x1xf32>
      %40 = vector.extract %39[0, 0, 0] : f32 from vector<1x1x1xf32>
      %cst_30 = arith.constant 2.500000e-01 : f32
      %41 = arith.mulf %cst_30, %40 : f32
      %c0_31 = arith.constant 0 : index
      %c0_32 = arith.constant 0 : index
      %42 = vector.load %arg9[%c0_31, %c0_32] : memref<32x32xf32, #tpu.memory_space<vmem>>, vector<32x32xf32>
      %43 = tpu.iota {dimensions = array<i32: 0>} : vector<32x32xi32>
      %44 = tpu.iota {dimensions = array<i32: 1>} : vector<32x32xi32>
      %45 = arith.cmpi eq, %43, %44 : vector<32x32xi32>
      %46 = arith.extui %45 : vector<32x32xi1> to vector<32x32xi32>
      %47 = arith.sitofp %46 : vector<32x32xi32> to vector<32x32xf32>
      %48 = arith.subf %42, %47 : vector<32x32xf32>
      %49 = arith.mulf %48, %48 : vector<32x32xf32>
      %50 = vector.shape_cast %49 : vector<32x32xf32> to vector<1x32x32xf32>
      %cst_33 = arith.constant dense<0.000000e+00> : vector<1xf32>
      %51 = vector.multi_reduction <add>, %50, %cst_33 [1, 2] : vector<1x32x32xf32> to vector<1xf32>
      %52 = vector.shape_cast %51 : vector<1xf32> to vector<1x1x1xf32>
      %53 = vector.extract %52[0, 0, 0] : f32 from vector<1x1x1xf32>
      %cst_34 = arith.constant 1.000000e-01 : f32
      %54 = arith.mulf %cst_34, %53 : f32
      %c0_35 = arith.constant 0 : index
      %c0_36 = arith.constant 0 : index
      %55 = vector.load %arg10[%c0_35, %c0_36] : memref<4x3xf32, #tpu.memory_space<vmem>>, vector<4x3xf32>
      %cst_37 = arith.constant dense<0xFF800000> : vector<4xf32>
      %56 = vector.multi_reduction <maximumf>, %55, %cst_37 [1] : vector<4x3xf32> to vector<4xf32>
      %57 = vector.shape_cast %56 : vector<4xf32> to vector<4x1xf32>
      %58 = vector.broadcast %57 : vector<4x1xf32> to vector<4x3xf32>
      %59 = arith.subf %55, %58 : vector<4x3xf32>
      %60 = math.exp %59 : vector<4x3xf32>
      %cst_38 = arith.constant dense<0.000000e+00> : vector<4xf32>
      %61 = vector.multi_reduction <add>, %60, %cst_38 [1] : vector<4x3xf32> to vector<4xf32>
      %62 = vector.shape_cast %61 : vector<4xf32> to vector<4x1xf32>
      %63 = math.log %62 : vector<4x1xf32>
      %64 = arith.addf %57, %63 : vector<4x1xf32>
      %65 = tpu.iota {dimensions = array<i32: 1>} : vector<4x3xi32>
      %c0_39 = arith.constant 0 : index
      %c0_40 = arith.constant 0 : index
      %66 = vector.load %arg7[%c0_39, %c0_40] : memref<4x1xi32, #tpu.memory_space<vmem>>, vector<4x1xi32>
      %67 = vector.broadcast %66 : vector<4x1xi32> to vector<4x3xi32>
      %68 = arith.cmpi eq, %65, %67 : vector<4x3xi32>
      %69 = arith.extui %68 : vector<4x3xi1> to vector<4x3xi32>
      %70 = arith.sitofp %69 : vector<4x3xi32> to vector<4x3xf32>
      %71 = arith.mulf %55, %70 : vector<4x3xf32>
      %cst_41 = arith.constant dense<0.000000e+00> : vector<4xf32>
      %72 = vector.multi_reduction <add>, %71, %cst_41 [1] : vector<4x3xf32> to vector<4xf32>
      %73 = vector.shape_cast %72 : vector<4xf32> to vector<4x1xf32>
      %74 = arith.subf %64, %73 : vector<4x1xf32>
      %75 = vector.shape_cast %74 : vector<4x1xf32> to vector<1x4x1xf32>
      %cst_42 = arith.constant dense<0.000000e+00> : vector<1xf32>
      %76 = vector.multi_reduction <add>, %75, %cst_42 [1, 2] : vector<1x4x1xf32> to vector<1xf32>
      %77 = vector.shape_cast %76 : vector<1xf32> to vector<1x1x1xf32>
      %78 = vector.extract %77[0, 0, 0] : f32 from vector<1x1x1xf32>
      %cst_43 = arith.constant 4.000000e+00 : f32
      %79 = arith.divf %78, %cst_43 : f32
      %80 = arith.addf %33, %41 : f32
      %81 = arith.addf %80, %54 : f32
      %82 = arith.addf %81, %79 : f32
      %c0_44 = arith.constant 0 : index
      %c0_45 = arith.constant 0 : index
      %83 = vector.load %arg12[%c0_44, %c0_45] : memref<4x5xf32, #tpu.memory_space<vmem>>, vector<4x5xf32>
      %cst_46 = arith.constant dense<0xFF800000> : vector<4xf32>
      %84 = vector.multi_reduction <maximumf>, %83, %cst_46 [1] : vector<4x5xf32> to vector<4xf32>
      %85 = vector.shape_cast %84 : vector<4xf32> to vector<4x1xf32>
      %86 = vector.broadcast %85 : vector<4x1xf32> to vector<4x5xf32>
      %87 = arith.subf %83, %86 : vector<4x5xf32>
      %88 = math.exp %87 : vector<4x5xf32>
      %cst_47 = arith.constant dense<0.000000e+00> : vector<4xf32>
      %89 = vector.multi_reduction <add>, %88, %cst_47 [1] : vector<4x5xf32> to vector<4xf32>
      %90 = vector.shape_cast %89 : vector<4xf32> to vector<4x1xf32>
      %91 = math.log %90 : vector<4x1xf32>
      %92 = arith.addf %85, %91 : vector<4x1xf32>
      %93 = tpu.iota {dimensions = array<i32: 1>} : vector<4x5xi32>
      %c0_48 = arith.constant 0 : index
      %c0_49 = arith.constant 0 : index
      %94 = vector.load %arg8[%c0_48, %c0_49] : memref<4x1xi32, #tpu.memory_space<vmem>>, vector<4x1xi32>
      %95 = vector.broadcast %94 : vector<4x1xi32> to vector<4x5xi32>
      %96 = arith.cmpi eq, %93, %95 : vector<4x5xi32>
      %97 = arith.extui %96 : vector<4x5xi1> to vector<4x5xi32>
      %98 = arith.sitofp %97 : vector<4x5xi32> to vector<4x5xf32>
      %99 = arith.mulf %83, %98 : vector<4x5xf32>
      %cst_50 = arith.constant dense<0.000000e+00> : vector<4xf32>
      %100 = vector.multi_reduction <add>, %99, %cst_50 [1] : vector<4x5xf32> to vector<4xf32>
      %101 = vector.shape_cast %100 : vector<4xf32> to vector<4x1xf32>
      %102 = arith.subf %92, %101 : vector<4x1xf32>
      %103 = vector.shape_cast %102 : vector<4x1xf32> to vector<1x4x1xf32>
      %cst_51 = arith.constant dense<0.000000e+00> : vector<1xf32>
      %104 = vector.multi_reduction <add>, %103, %cst_51 [1, 2] : vector<1x4x1xf32> to vector<1xf32>
      %105 = vector.shape_cast %104 : vector<1xf32> to vector<1x1x1xf32>
      %106 = vector.extract %105[0, 0, 0] : f32 from vector<1x1x1xf32>
      %cst_52 = arith.constant 4.000000e+00 : f32
      %107 = arith.divf %106, %cst_52 : f32
      %c0_53 = arith.constant 0 : index
      %108 = memref.load %arg14[%c0_53] : memref<2xf32, #tpu.memory_space<smem>>
      memref.store %82, %arg14[%c0_53] : memref<2xf32, #tpu.memory_space<smem>>
      %c1 = arith.constant 1 : index
      %109 = memref.load %arg14[%c1] : memref<2xf32, #tpu.memory_space<smem>>
      memref.store %107, %arg14[%c1] : memref<2xf32, #tpu.memory_space<smem>>
    } else {
    }
    return
  }
  func.func @transform_0(%arg0: i32) -> (i32, i32) {
    %c0_i32 = arith.constant 0 : i32
    %c0_i32_0 = arith.constant 0 : i32
    return %c0_i32, %arg0 : i32, i32
  }
  func.func @transform_1(%arg0: i32) -> (i32, i32) {
    %c0_i32 = arith.constant 0 : i32
    %c0_i32_0 = arith.constant 0 : i32
    return %c0_i32, %arg0 : i32, i32
  }
  func.func @transform_2(%arg0: i32) -> (i32, i32) {
    %c0_i32 = arith.constant 0 : i32
    %c0_i32_0 = arith.constant 0 : i32
    return %c0_i32, %arg0 : i32, i32
  }
  func.func @transform_3(%arg0: i32) -> (i32, i32) {
    %c0_i32 = arith.constant 0 : i32
    %c0_i32_0 = arith.constant 0 : i32
    return %c0_i32, %arg0 : i32, i32
  }
  func.func @transform_4(%arg0: i32) -> (i32, i32) {
    %c0_i32 = arith.constant 0 : i32
    %c0_i32_0 = arith.constant 0 : i32
    %c0_i32_1 = arith.constant 0 : i32
    return %c0_i32, %c0_i32_0 : i32, i32
  }
  func.func @transform_5(%arg0: i32) -> (i32, i32) {
    %c0_i32 = arith.constant 0 : i32
    %c0_i32_0 = arith.constant 0 : i32
    %c0_i32_1 = arith.constant 0 : i32
    return %c0_i32, %c0_i32_0 : i32, i32
  }
  func.func @transform_6(%arg0: i32) -> (i32, i32) {
    %c0_i32 = arith.constant 0 : i32
    %c0_i32_0 = arith.constant 0 : i32
    %c0_i32_1 = arith.constant 0 : i32
    return %c0_i32, %c0_i32_0 : i32, i32
  }
  func.func @transform_7(%arg0: i32) -> (i32, i32) {
    %c0_i32 = arith.constant 0 : i32
    %c0_i32_0 = arith.constant 0 : i32
    %c0_i32_1 = arith.constant 0 : i32
    return %c0_i32, %c0_i32_0 : i32, i32
  }
  func.func @transform_8(%arg0: i32) -> (i32, i32) {
    %c0_i32 = arith.constant 0 : i32
    %c0_i32_0 = arith.constant 0 : i32
    %c0_i32_1 = arith.constant 0 : i32
    return %c0_i32, %c0_i32_0 : i32, i32
  }
  func.func @transform_9(%arg0: i32) -> (i32, i32) {
    %c0_i32 = arith.constant 0 : i32
    %c0_i32_0 = arith.constant 0 : i32
    %c0_i32_1 = arith.constant 0 : i32
    return %c0_i32, %c0_i32_0 : i32, i32
  }
  func.func @transform_10(%arg0: i32) -> (i32, i32) {
    %c0_i32 = arith.constant 0 : i32
    %c0_i32_0 = arith.constant 0 : i32
    %c0_i32_1 = arith.constant 0 : i32
    return %c0_i32, %c0_i32_0 : i32, i32
  }
  func.func @transform_11(%arg0: i32) -> (i32, i32) {
    %c0_i32 = arith.constant 0 : i32
    %c0_i32_0 = arith.constant 0 : i32
    %c0_i32_1 = arith.constant 0 : i32
    return %c0_i32, %c0_i32_0 : i32, i32
  }
  func.func @transform_12(%arg0: i32) -> i32 {
    %c0_i32 = arith.constant 0 : i32
    %c0_i32_0 = arith.constant 0 : i32
    return %c0_i32 : i32
  }
  func.func @transform_13(%arg0: i32) -> i32 {
    %c0_i32 = arith.constant 0 : i32
    %c0_i32_0 = arith.constant 0 : i32
    return %c0_i32 : i32
  }
}

</mosaic_0001>

<bundles_post_ra>
// kernel: _toad_loss_jit.1
= control target key start
LH: loop header
LB: loop body
LE: loop exit
PB: predicated region body
PF: predicated region fallthrough
CT: control target
= control target key end

     0   :  { %vm165_vm0 = vcmask 19456   ;;  %vm207_vm1 = vcmask 35840   ;;  %v315_v4 = vmov 0   ;;  %s469_s0 = inlined_call_operand.vmem [shape: f32[4,256], index: 0, kind: input, shape index: {}]   ;;  %s470_s1 = inlined_call_operand.vmem [shape: f32[4,256], index: 1, kind: input, shape index: {}]   ;;  %s471_s2 = inlined_call_operand.vmem [shape: f32[4,128], index: 2, kind: input, shape index: {}]   ;;  %s472_s3 = inlined_call_operand.vmem [shape: f32[4,128], index: 3, kind: input, shape index: {}]   ;;  %s473_s4 = inlined_call_operand.vmem [shape: f32[4,1], index: 4, kind: input, shape index: {}]   ;;  %s474_s5 = inlined_call_operand.vmem [shape: f32[4,1], index: 5, kind: input, shape index: {}]   ;;  %s475_s6 = inlined_call_operand.vmem [shape: s32[4,1], index: 6, kind: input, shape index: {}]   ;;  %s476_s7 = inlined_call_operand.vmem [shape: s32[4,1], index: 7, kind: input, shape index: {}]   ;;  %s477_s8 = inlined_call_operand.vmem [shape: f32[32,32], index: 8, kind: input, shape index: {}]   ;;  %s478_s9 = inlined_call_operand.vmem [shape: f32[4,3], index: 9, kind: input, shape index: {}]   ;;  %s479_s10 = inlined_call_operand.vmem [shape: f32[4,5], index: 10, kind: input, shape index: {}]   ;;  %s480_s11 = inlined_call_operand.vmem [shape: f32[4,5], index: 11, kind: input, shape index: {}]   ;;  %s481_s12 = inlined_call_operand.<no memory space> [shape: f32[1], index: 12, kind: input, shape index: {}]   ;;  %s482_s13 = inlined_call_operand.vmem [shape: f32[2], index: 13, kind: output, shape index: {}]  }
   0x1   :  { %v391_v0 = vld [vmem:[%s478_s9] sm:$0xf]  ;;  %283 = vset.pattern.permute.xlu1 %v315_v4  ;;  %284 = vset.pattern.permute.xlu0 %v315_v4 }
   0x2   :  { %v396_v1 = vld [vmem:[%s480_s11] sm:$0xf]  ;;  %v166_v2 = vsel %vm165_vm0, %v391_v0, -inf }
   0x3   :  { %v178_v3 = vld [vmem:[%s475_s6] sm:$0xf]  ;;  %167 = vmax.xlane.f32.xlu0 %v166_v2  ;;  %v208_v6 = vsel %vm207_vm1, %v396_v1, -inf }
   0x4   :  { %v71_v5 = vld [vmem:[%s471_s2] sm:$0xf]  ;;  %180 = vperm.xlu1 %283, %v178_v3  }
   0x5   :  { %285 = vtanh.f32 %v71_v5 }
   0x6   :  { %19 = vsyncpa [#allocation6], 0  ;;  %v220_v7 = vld [vmem:[%s476_s7] sm:$0xf]  ;;  %vm62_vm2 = vcmask 1043456   ;;  %vm50_vm3 = vcmask 3072   ;;  %v119_v23 = vlaneseq }
   0x7   :  { %209 = vmax.xlane.f32.xlu0 %v208_v6  ;;  %v53_v8 = vld [vmem:[%s469_s0] sm:$0xff]  ;;  %v316_v22 = vmov 0.0   ;;  %v116_v37 = vld [vmem:[%s477_s8 + $0x8] sm:$0xff]  ;;  %v117_v40 = vld [vmem:[%s477_s8 + $0x10] sm:$0xff]  ;;  %vm146_vm9 = vcmask 261120   ;;  %s255_s11 = sshll.u32 %s482_s13, 4  ;;  %s256_s11 = int_to_ptr.vmem [resolvable:$true] %s255_s11 }
   0x8   :  { %222 = vperm.xlu1 %283, %v220_v7   ;;  %v72_v9 = vld [vmem:[%s472_s3] sm:$0xf]  ;;  %287 = vtanh.f32 %v53_v8  ;;  %52 = vst.msk [vmem:[#allocation3] sm:$0xf] %vm50_vm3, %v316_v22  ;;  %51 = vst.msk [vmem:[#allocation2] sm:$0xf] %vm50_vm3, %v316_v22  ;;  %p306_p1 = scmp.lt.s32.totalorder %s256_s11, %s256_s11 }
   0x9   :  { %v54_v15 = vld [vmem:[%s470_s1] sm:$0xff]  ;;  %v120_v24 = vshrl.u32 %v119_v23, 7  ;;  %v125_v28 = vand.u32 127, %v119_v23  ;;  %v118_v46 = vld [vmem:[%s477_s8 + $0x18] sm:$0xff]  ;;  %s301_s2 = scalar_lea.vmem %s256_s11, 16 }
   0xa   :  { %v115_v36 = vld [vmem:[%s477_s8] sm:$0xff]  ;;  %p302_p0 = scmp.ne.s32.totalorder %s256_s11, %s301_s2  ;;  %p307_p2 = scmp.lt.s32.totalorder %s301_s2, %s301_s2 }
   0xb   :  { %v121_v26 = vadd.s32 8, %v120_v24  ;;  %v122_v30 = vadd.s32 16, %v120_v24  ;;  %vm126_vm4 = vcmp.eq.s32.totalorder %v120_v24, %v125_v28  ;;  %v123_v33 = vadd.s32 24, %v120_v24  ;;  %v101_v50 = vld [vmem:[%s474_s5] sm:$0xf] }
   0xc   :  { %v264_v38 = vsel %vm126_vm4, 1.0, %v316_v22  ;;  %p308_p3 = por %p307_p2, %p306_p1 }
   0xd   :  { %vm127_vm5 = vcmp.eq.s32.totalorder %v121_v26, %v125_v28  ;;  %vm128_vm6 = vcmp.eq.s32.totalorder %v122_v30, %v125_v28  ;;  %v138_v42 = vsub.f32 %v115_v36, %v264_v38  ;;  %vm129_vm7 = vcmp.eq.s32.totalorder %v123_v33, %v125_v28 }
   0xe   :  { %v265_v39 = vsel %vm127_vm5, 1.0, %v316_v22  ;;  %v266_v41 = vsel %vm128_vm6, 1.0, %v316_v22  ;;  %v267_v47 = vsel %vm129_vm7, 1.0, %v316_v22  ;;  %p309_p4 = pnand %p308_p3, %p302_p0 }
   0xf   :  { %v286_v10 = vpop.eup %285  ;;  %v139_v43 = vsub.f32 %v116_v37, %v265_v39  ;;  %v140_v45 = vsub.f32 %v117_v40, %v266_v41  ;;  %v142_v48 = vmul.f32 %v138_v42, %v138_v42  ;;  %v75_v53 = vld [vmem:[#allocation3] sm:$0xf]  ;;  %v141_v56 = vsub.f32 %v118_v46, %v267_v47 }
  0x10   :  { %v74_v11 = vsub.f32 %v72_v9, %v286_v10 }
  0x11   :  { %v143_v49 = vmul.f32 %v139_v43, %v139_v43  ;;  %v144_v57 = vmul.f32 %v140_v45, %v140_v45  ;;  %v147_v60 = vsel %vm146_vm9, %v142_v48, 0.0  ;;  %v145_v6 = vmul.f32 %v141_v56, %v141_v56 }
  0x12   :  { %v76_v12 = vmul.f32 %v74_v11, %v74_v11  ;;  %v288_v14 = vpop.eup %287 }
  0x13   :  { %v56_v16 = vsub.f32 %v54_v15, %v288_v14  ;;  %v148_v61 = vsel %vm146_vm9, %v143_v49, 0.0  ;;  %v152_v9 = vsel %vm146_vm9, %v145_v6, 0.0  ;;  %v57_v15 = vld [vmem:[#allocation2] sm:$0xf] }
  0x14   :  { %v77_v13 = vsel %vm62_vm2, %v76_v12, 0.0  ;;  %v149_v3 = vadd.f32 %v148_v61, %v147_v60 }
  0x15   :  { %78 = vadd.xlane.f32.xlu0 %v77_v13  ;;  %v58_v17 = vmul.f32 %v56_v16, %v56_v16 }
  0x17   :  { %v60_v18 = vcombine.high %v58_v17, %v58_v17  ;;  %v63_v19 = vsel %vm62_vm2, %v58_v17, 0.0 }
  0x19   :  { %v64_v20 = vsel %vm62_vm2, %v60_v18, 0.0 }
  0x1a   :  { %v65_v21 = vadd.f32 %v64_v20, %v63_v19 }
  0x2c   :  { %66 = vadd.xlane.f32.xlu1 %v65_v21 }
  0x83   :  { %v181_v35 = vpop.permute.xlu1 %180 }
  0x84   :  { %vm182_vm8 = vcmp.eq.s32.totalorder %v125_v28, %v181_v35 }
  0x85   :  { %v268_v52 = vsel %vm182_vm8, 1.0, %v316_v22 }
  0x86   :  { %v185_v58 = vmul.f32 %v268_v52, %v391_v0 }
  0x87   :  { %v223_v44 = vpop.permute.xlu1 %222 }
  0x88   :  { %vm224_vm10 = vcmp.eq.s32.totalorder %v125_v28, %v223_v44  ;;  %v186_v4 = vsel %vm165_vm0, %v185_v58, 0.0 }
  0x89   :  { %v269_v63 = vsel %vm224_vm10, 1.0, %v316_v22 }
  0x8a   :  { %v227_v5 = vmul.f32 %v269_v63, %v396_v1 }
  0x8c   :  { %v228_v8 = vsel %vm207_vm1, %v227_v5, 0.0 }
  0x90   :  { %v422_v25 = vpop.xlane.xlu0 %167 }
  0x91   :  { %v169_v27 = vsub.f32 %v391_v0, %v422_v25  ;;  %v150_v0 = vsel %vm146_vm9, %v144_v57, 0.0 }
  0x92   :  { %v151_v7 = vadd.f32 %v150_v0, %v149_v3 }
  0x93   :  { %v170_v29 = vmul.f32 1.442695, %v169_v27 }
  0x94   :  { %v426_v31 = vpop.xlane.xlu0 %209  ;;  %v153_v12 = vadd.f32 %v152_v9, %v151_v7 }
  0x95   :  { %289 = vpow2.f32 %v170_v29  ;;  %v211_v32 = vsub.f32 %v396_v1, %v426_v31  ;;  %v86_v1 = vld [vmem:[%s473_s4] sm:$0xf] }
  0x97   :  { %v212_v34 = vmul.f32 1.442695, %v211_v32 }
  0x99   :  { %291 = vpow2.f32 %v212_v34 }
  0x9a   :  { %293 = vrcp.f32 %v101_v50 }
  0x9b   :  { %295 = vrcp.f32 %v86_v1 }
  0x9f   :  { %v290_v51 = vpop.eup %289 }
  0xa0   :  { %v172_v54 = vsel %vm165_vm0, %v290_v51, 0.0 }
  0xa1   :  { %173 = vadd.xlane.f32.xlu0 %v172_v54 }
  0xa2   :  { %v79_v55 = vpop.xlane.xlu0 %78 }
  0xa3   :  { %v80_v59 = vadd.f32 %v79_v55, %v75_v53  ;;  %v292_v62 = vpop.eup %291 }
  0xa4   :  { %v214_v2 = vsel %vm207_vm1, %v292_v62, 0.0  ;;  %v294_v10 = vpop.eup %293 }
  0xa5   :  { %81 = vst.msk [vmem:[#allocation3] sm:$0xf] %vm50_vm3, %v80_v59  ;;  %215 = vadd.xlane.f32.xlu0 %v214_v2  ;;  %v296_v18 = vpop.eup %295 }
  0xa9   :  { %187 = vadd.xlane.f32.xlu0 %v186_v4 }
  0xac   :  { %v100_v11 = vld [vmem:[#allocation3] sm:$0xf] }
  0xad   :  { %229 = vadd.xlane.f32.xlu0 %v228_v8  ;;  %v103_v13 = vmul.f32 %v294_v10, %v100_v11 }
  0xaf   :  { %v104_v14 = vsel %vm50_vm3, %v103_v13, 0.0 }
  0xb1   :  { %154 = vadd.xlane.f32.xlu0 %v153_v12 }
  0xb5   :  { %105 = vadd.xlane.f32.xlu0 %v104_v14 }
  0xb9   :  { %v67_v16 = vpop.xlane.xlu1 %66 }
  0xba   :  { %v68_v17 = vadd.f32 %v67_v16, %v57_v15 }
  0xbc   :  { %70 = vst.msk [vmem:[#allocation2] sm:$0xf] %vm50_vm3, %v68_v17 }
  0xc3   :  { %v85_v19 = vld [vmem:[#allocation2] sm:$0xf] }
  0xc4   :  { %v88_v20 = vmul.f32 %v296_v18, %v85_v19 }
  0xc6   :  { %v89_v21 = vsel %vm50_vm3, %v88_v20, 0.0 }
  0xc7   :  { %90 = vadd.xlane.f32.xlu0 %v89_v21 }
 0x12e   :  { %v174_v22 = vpop.xlane.xlu0 %173 }
 0x12f   :  { %297 = vlog2.f32 %v174_v22 }
 0x132   :  { %v216_v23 = vpop.xlane.xlu0 %215 }
 0x133   :  { %299 = vlog2.f32 %v216_v23 }
 0x136   :  { %v188_v26 = vpop.xlane.xlu0 %187 }
 0x139   :  { %v298_v24 = vpop.eup %297 }
 0x13a   :  { %v176_v27 = vmul.f32 0.6931472, %v298_v24  ;;  %v230_v33 = vpop.xlane.xlu0 %229 }
 0x13c   :  { %v177_v28 = vadd.f32 %v176_v27, %v422_v25 }
 0x13d   :  { %v300_v29 = vpop.eup %299 }
 0x13e   :  { %v218_v30 = vmul.f32 0.6931472, %v300_v29  ;;  %v189_v32 = vsub.f32 %v177_v28, %v188_v26  ;;  %v155_v37 = vpop.xlane.xlu0 %154 }
 0x13f   :  { %v156_v41 = vrot.slane %v155_v37, 4 }
 0x140   :  { %v219_v34 = vadd.f32 %v218_v30, %v426_v31  ;;  %v190_v35 = vsel %vm50_vm3, %v189_v32, 0.0 }
 0x141   :  { %191 = vadd.xlane.f32.xlu0 %v190_v35  ;;  %v157_v43 = vadd.f32 %v156_v41, %v155_v37 }
 0x142   :  { %v231_v36 = vsub.f32 %v219_v34, %v230_v33  ;;  %v106_v39 = vpop.xlane.xlu0 %105 }
 0x143   :  { %v107_v40 = vrot.slane %v106_v39, 4  ;;  %v158_v44 = vrot.slane %v157_v43, 2 }
 0x144   :  { %v232_v38 = vsel %vm50_vm3, %v231_v36, 0.0 }
 0x145   :  { %233 = vadd.xlane.f32.xlu0 %v232_v38  ;;  %v108_v42 = vadd.f32 %v107_v40, %v106_v39  ;;  %v159_v31 = vadd.f32 %v158_v44, %v157_v43 }
 0x147   :  { %v109_v25 = vrot.slane %v108_v42, 2  ;;  %v160_v52 = vrot.slane %v159_v31, 1 }
 0x149   :  { %v110_v47 = vadd.f32 %v109_v25, %v108_v42  ;;  %v161_v56 = vadd.f32 %v160_v52, %v159_v31 }
 0x14b   :  { %v111_v50 = vrot.slane %v110_v47, 1 }
 0x14d   :  { %v112_v54 = vadd.f32 %v111_v50, %v110_v47 }
 0x154   :  { %v91_v45 = vpop.xlane.xlu0 %90 }
 0x155   :  { %v92_v46 = vrot.slane %v91_v45, 4 }
 0x157   :  { %v93_v48 = vadd.f32 %v92_v46, %v91_v45 }
 0x159   :  { %v94_v49 = vrot.slane %v93_v48, 2 }
 0x15b   :  { %v95_v51 = vadd.f32 %v94_v49, %v93_v48 }
 0x15d   :  { %v96_v53 = vrot.slane %v95_v51, 1 }
 0x15f   :  { %v97_v55 = vadd.f32 %v96_v53, %v95_v51 }
 0x161   :  { %270 = vpush %v97_v55 }
 0x162   :  { %272 = vpush %v112_v54 }
 0x163   :  { %274 = vpush %v161_v56 }
 0x192   :  { %s271_s4 = spop %270 }
 0x193   :  { %s273_s24 = spop %272  ;;  %s99_s25 = smul.f32 0.25, %s271_s4 }
 0x194   :  { %s114_s26 = smul.f32 0.25, %s273_s24  ;;  %s275_s27 = spop %274 }
 0x195   :  { %s163_s10 = smul.f32 0.1, %s275_s27 }
 0x196   :  { %s203_s28 = sadd.f32 %s114_s26, %s99_s25 }
 0x198   :  { %s204_s30 = sadd.f32 %s203_s28, %s163_s10 }
 0x1ce   :  { %v192_v57 = vpop.xlane.xlu0 %191 }
 0x1cf   :  { %v193_v58 = vrot.slane %v192_v57, 4 }
 0x1d1   :  { %v194_v59 = vadd.f32 %v193_v58, %v192_v57 }
 0x1d2   :  { %v234_v60 = vpop.xlane.xlu0 %233 }
 0x1d3   :  { %v195_v61 = vrot.slane %v194_v59, 2  ;;  %v235_v62 = vrot.slane %v234_v60, 4 }
 0x1d5   :  { %v236_v63 = vadd.f32 %v235_v62, %v234_v60  ;;  %v196_v2 = vadd.f32 %v195_v61, %v194_v59 }
 0x1d7   :  { %v237_v3 = vrot.slane %v236_v63, 2  ;;  %v197_v4 = vrot.slane %v196_v2, 1 }
 0x1d9   :  { %v238_v5 = vadd.f32 %v237_v3, %v236_v63  ;;  %v198_v6 = vadd.f32 %v197_v4, %v196_v2 }
 0x1db   :  { %276 = vpush %v198_v6  ;;  %v239_v0 = vrot.slane %v238_v5, 1 }
 0x1dd   :  { %v240_v7 = vadd.f32 %v239_v0, %v238_v5 }
 0x1df   :  { %278 = vpush %v240_v7 }
 0x20c   :  { %s277_s12 = spop %276 }
 0x20d   :  { %s202_s6 = smul.f32 0.25, %s277_s12 }
 0x20f   :  { %s205_s14 = sadd.f32 %s204_s30, %s202_s6 }
 0x210   :  { %s279_s15 = spop %278 }
 0x211   :  { %246 = sst [smem:[#allocation5]] %s205_s14  ;;  %s244_s16 = smul.f32 0.25, %s279_s15 }
 0x213   :  { %248 = sst [smem:[#allocation5 + $0x1]] %s244_s16 }
 0x214   :  { %312 = shalt.err (!%p309_p4)
}
 0x215   :  { %s317_s7 = smov [#allocation5]  }
 0x216   :  { %258 = dma.smem_to_vmem %s317_s7, 16, %s256_s11, [#allocation6]  }
 0x217   :  { %313 = dma.done.wait [#allocation6], 16  }
 0x218   :  { %314 = vsyncadd [#allocation6], 4294967280 }
 0x219   :  { %262 = sfence }
 0x21a   :  { %263 = vsyncpa [#allocation6], 1 }

</bundles_post_ra>
